<compile_context>
chip_gen: v7x
topology: tpu7x:2x2x1
jax: 0.10.0
libtpu: 0.0.40
codegen_flags: <defaults>
</compile_context>

<pallas_src>
import jax
import jax.numpy as jnp
from jax.experimental import pallas as pl
from jax.experimental.pallas import tpu as pltpu

_LANES = 128


def _transform_kernel(img_ref, scale_ref, offset_ref, out_img_ref, out_mask_ref):
    x = img_ref[...]                     # (tN, C, tR, 128)  sublanes=tR, lanes=128
    scale = scale_ref[...]               # (1, C, 1, 1)
    offset = offset_ref[...]             # (1, C, 1, 1)

    # ((x - mean)/std) * gain + bias  ==  x * scale + offset   (one mul + one add / elem)
    out_img_ref[...] = (x * scale + offset).astype(out_img_ref.dtype)

    # Any-channel-nonzero mask. C is a slab axis (not sublane/lane), so this is
    # C-1 elementwise VPU maxes, no XLU cross-sublane reduction.
    valid = jnp.max(jnp.abs(x), axis=1, keepdims=True) > 0.0     # (tN, 1, tR, 128)
    out_mask_ref[...] = valid.astype(out_mask_ref.dtype)


def _pick_tiles(N, C, R, *, budget_bytes=4 << 20, min_total_steps=8):
    """Pick (tN, tR) for blocks of shape (tN, C, tR, 128).

    Real (padded) per-step working set = tN * tR * 128 * 4 * (2C + 1) bytes
    (input slab + image-out slab + mask slab); targets ~4 MiB per step, i.e.
    ~8-9 MiB resident once double-buffered.
    """
    row_bytes = (2 * C + 1) * _LANES * 4            # bytes per tR-row per image

    # Largest multiple-of-8 divisor of R within the budget.
    tR = min(R, max(8, (budget_bytes // row_bytes) // 8 * 8))
    while R % tR:                                   # R % 8 == 0 -> terminates at 8
        tR -= 8

    # Keep enough grid steps so each v7x TensorCore gets several iterations to
    # double-buffer (grid axes are sharded across the 2 TCs).
    while N * (R // tR) < min_total_steps and tR > 8:
        tR -= 8
        while R % tR:
            tR -= 8

    # Tiny spatial extents: batch images per step so each step moves >=1 MiB,
    # but never at the cost of dropping below the step-count floor.
    tN = 1
    step_bytes = row_bytes * tR
    while (step_bytes * tN < (1 << 20) and tN < N and N % (2 * tN) == 0
           and (N // (2 * tN)) * (R // tR) >= min_total_steps):
        tN *= 2
    return tN, tR


def transform_forward(image, mean, std, gain, bias):
    """image: (N, C, H, W) float32. mean/std/gain/bias broadcastable to (1, C, 1, 1).

    Returns {'image': (N, C, H, W) f32, 'mask': (N, 1, H, W) f32}.
    """
    N, C, H, W = image.shape
    S = H * W
    # Pad spatial extent to a multiple of 8*128 so R = S_pad/128 is a multiple
    # of 8 -> every block is an exact stack of (8,128) vreg tiles, no masked
    # partial stores, and spatial tiling always stays available.
    S_pad = -(-S // (8 * _LANES)) * (8 * _LANES)
    R = S_pad // _LANES

    # Fold the four per-channel parameters into (scale, offset).
    mean_c = jnp.reshape(mean, (C,)).astype(jnp.float32)
    std_c = jnp.reshape(std, (C,)).astype(jnp.float32)
    gain_c = jnp.reshape(gain, (C,)).astype(jnp.float32)
    bias_c = jnp.reshape(bias, (C,)).astype(jnp.float32)
    scale_c = gain_c / std_c
    offset_c = bias_c - mean_c * scale_c
    scale = scale_c.reshape(1, C, 1, 1)
    offset = offset_c.reshape(1, C, 1, 1)

    # Lane/sublane-dense layout: (N, C, S) -> pad -> (N, C, R, 128).
    x = image.reshape(N, C, S)
    if S_pad != S:
        x = jnp.pad(x, ((0, 0), (0, 0), (0, S_pad - S)))   # zeros -> mask 0, cropped later
    x = x.reshape(N, C, R, _LANES)

    tN, tR = _pick_tiles(N, C, R)
    grid = (N // tN, R // tR)

    img_spec = pl.BlockSpec((tN, C, tR, _LANES), lambda n, r: (n, 0, r, 0))
    mask_spec = pl.BlockSpec((tN, 1, tR, _LANES), lambda n, r: (n, 0, r, 0))
    param_spec = pl.BlockSpec((1, C, 1, 1), lambda n, r: (0, 0, 0, 0))

    cost = pl.CostEstimate(
        flops=2 * N * C * S_pad,              # one mul + one add per element
        transcendentals=0,
        bytes_accessed=N * S_pad * (2 * C + 1) * 4,
    )

    out_img, out_mask = pl.pallas_call(
        _transform_kernel,
        out_shape=(
            jax.ShapeDtypeStruct((N, C, R, _LANES), jnp.float32),
            jax.ShapeDtypeStruct((N, 1, R, _LANES), jnp.float32),
        ),
        grid_spec=pltpu.PrefetchScalarGridSpec(
            num_scalar_prefetch=0,
            grid=grid,
            in_specs=[img_spec, param_spec, param_spec],
            out_specs=[img_spec, mask_spec],
        ),
        compiler_params=pltpu.CompilerParams(
            dimension_semantics=("parallel", "parallel"),
            vmem_limit_bytes=24 << 20,        # ~8-9 MiB resident + headroom; OK on v5e/v6e/v7x
        ),
        cost_estimate=cost,
    )(x, scale, offset)

    out_img = out_img.reshape(N, C, S_pad)[:, :, :S].reshape(N, C, H, W)
    out_mask = out_mask.reshape(N, 1, S_pad)[:, :, :S].reshape(N, 1, H, W)
    return {"image": out_img, "mask": out_mask}


if __name__ == "__main__":
    # Small shapes consistent with an image-transform module.
    N, C, H, W = 2, 4, 16, 16
    key = jax.random.PRNGKey(0)
    image = jax.random.normal(key, (N, C, H, W), dtype=jnp.float32) + 0.5

    # Deterministic synthetic parameters (Preprocessor mean/std, Augment gain/bias).
    mean = jnp.array([0.485, 0.456, 0.406, 0.500], jnp.float32).reshape(1, C, 1, 1)
    std = jnp.array([0.229, 0.224, 0.225, 0.250], jnp.float32).reshape(1, C, 1, 1)
    gain = jnp.array([1.10, 0.95, 1.05, 1.00], jnp.float32).reshape(1, C, 1, 1)
    bias = jnp.array([0.05, -0.02, 0.00, 0.03], jnp.float32).reshape(1, C, 1, 1)

    out = transform_forward(image, mean, std, gain, bias)
    jax.block_until_ready(out)

    # Reference check in plain JAX (un-folded form).
    # TODO(synk): AugmentData's random flips/crops have no in-kernel RNG config here;
    # only the deterministic photometric part is implemented.
    ref_img = ((image - mean) / std) * gain + bias
    ref_mask = (jnp.max(jnp.abs(image), axis=1, keepdims=True) > 0).astype(jnp.float32)
    assert out["image"].shape == (N, C, H, W)
    assert out["mask"].shape == (N, 1, H, W)
    assert jnp.allclose(out["image"], ref_img, atol=1e-5, rtol=1e-5)
    assert jnp.allclose(out["mask"], ref_mask)

    print("KERNEL_OK")
</pallas_src>

<mosaic_0001>
module attributes {stable_mosaic.version = 11 : i64} {
  func.func @_transform_kernel(%arg0: i32, %arg1: i32, %arg2: memref<1x4x8x128xf32, #tpu.memory_space<vmem>>, %arg3: memref<1x4x1x1xf32, #tpu.memory_space<vmem>>, %arg4: memref<1x4x1x1xf32, #tpu.memory_space<vmem>>, %arg5: memref<1x4x8x128xf32, #tpu.memory_space<vmem>>, %arg6: memref<1x1x8x128xf32, #tpu.memory_space<vmem>>) attributes {dimension_semantics = [#tpu.dimension_semantics<parallel>, #tpu.dimension_semantics<parallel>], iteration_bounds = array<i64: 2, 1>, scalar_prefetch = 0 : i64, scratch_operands = 0 : i64, tpu.core_type = #tpu.core_type<tc>, window_params = [{transform_indices = @transform_0, window_bounds = array<i64: 1, 4, 8, 128>}, {pipeline_mode = #tpu.pipeline_mode<synchronous>, transform_indices = @transform_1, window_bounds = array<i64: 1, 4, 1, 1>}, {pipeline_mode = #tpu.pipeline_mode<synchronous>, transform_indices = @transform_2, window_bounds = array<i64: 1, 4, 1, 1>}, {transform_indices = @transform_3, window_bounds = array<i64: 1, 4, 8, 128>}, {transform_indices = @transform_4, window_bounds = array<i64: 1, 1, 8, 128>}]} {
    %c0 = arith.constant 0 : index
    %c0_0 = arith.constant 0 : index
    %c0_1 = arith.constant 0 : index
    %c0_2 = arith.constant 0 : index
    %0 = vector.load %arg2[%c0, %c0_0, %c0_1, %c0_2] : memref<1x4x8x128xf32, #tpu.memory_space<vmem>>, vector<1x4x8x128xf32>
    %c0_3 = arith.constant 0 : index
    %c0_4 = arith.constant 0 : index
    %c0_5 = arith.constant 0 : index
    %c0_6 = arith.constant 0 : index
    %1 = vector.load %arg3[%c0_3, %c0_4, %c0_5, %c0_6] : memref<1x4x1x1xf32, #tpu.memory_space<vmem>>, vector<1x4x1x1xf32>
    %c0_7 = arith.constant 0 : index
    %c0_8 = arith.constant 0 : index
    %c0_9 = arith.constant 0 : index
    %c0_10 = arith.constant 0 : index
    %2 = vector.load %arg4[%c0_7, %c0_8, %c0_9, %c0_10] : memref<1x4x1x1xf32, #tpu.memory_space<vmem>>, vector<1x4x1x1xf32>
    %3 = vector.broadcast %1 : vector<1x4x1x1xf32> to vector<1x4x8x128xf32>
    %4 = arith.mulf %0, %3 : vector<1x4x8x128xf32>
    %5 = vector.broadcast %2 : vector<1x4x1x1xf32> to vector<1x4x8x128xf32>
    %6 = arith.addf %4, %5 : vector<1x4x8x128xf32>
    %c0_11 = arith.constant 0 : index
    %c0_12 = arith.constant 0 : index
    %c0_13 = arith.constant 0 : index
    %c0_14 = arith.constant 0 : index
    %7 = vector.load %arg5[%c0_11, %c0_12, %c0_13, %c0_14] : memref<1x4x8x128xf32, #tpu.memory_space<vmem>>, vector<1x4x8x128xf32>
    tpu.vector_store %arg5[%c0_11, %c0_12, %c0_13, %c0_14], %6 {strides = array<i32>} : memref<1x4x8x128xf32, #tpu.memory_space<vmem>>, vector<1x4x8x128xf32>,
    %8 = math.absf %0 : vector<1x4x8x128xf32>
    %cst = arith.constant dense<0xFF800000> : vector<1x8x128xf32>
    %9 = vector.multi_reduction <maximumf>, %8, %cst [1] : vector<1x4x8x128xf32> to vector<1x8x128xf32>
    %10 = vector.shape_cast %9 : vector<1x8x128xf32> to vector<1x1x8x128xf32>
    %cst_15 = arith.constant 0.000000e+00 : f32
    %11 = vector.broadcast %cst_15 : f32 to vector<1x1x8x128xf32>
    %12 = arith.cmpf ogt, %10, %11 : vector<1x1x8x128xf32>
    %13 = arith.extui %12 : vector<1x1x8x128xi1> to vector<1x1x8x128xi32>
    %14 = arith.sitofp %13 : vector<1x1x8x128xi32> to vector<1x1x8x128xf32>
    %c0_16 = arith.constant 0 : index
    %c0_17 = arith.constant 0 : index
    %c0_18 = arith.constant 0 : index
    %c0_19 = arith.constant 0 : index
    %15 = vector.load %arg6[%c0_16, %c0_17, %c0_18, %c0_19] : memref<1x1x8x128xf32, #tpu.memory_space<vmem>>, vector<1x1x8x128xf32>
    tpu.vector_store %arg6[%c0_16, %c0_17, %c0_18, %c0_19], %14 {strides = array<i32>} : memref<1x1x8x128xf32, #tpu.memory_space<vmem>>, vector<1x1x8x128xf32>,
    return
  }
  func.func @transform_0(%arg0: i32, %arg1: i32) -> (i32, i32, i32, i32) {
    %c0_i32 = arith.constant 0 : i32
    %c0_i32_0 = arith.constant 0 : i32
    %c0_i32_1 = arith.constant 0 : i32
    return %arg0, %c0_i32, %arg1, %c0_i32_0 : i32, i32, i32, i32
  }
  func.func @transform_1(%arg0: i32, %arg1: i32) -> (i32, i32, i32, i32) {
    %c0_i32 = arith.constant 0 : i32
    %c0_i32_0 = arith.constant 0 : i32
    %c0_i32_1 = arith.constant 0 : i32
    %c0_i32_2 = arith.constant 0 : i32
    %c0_i32_3 = arith.constant 0 : i32
    return %c0_i32, %c0_i32_0, %c0_i32_1, %c0_i32_2 : i32, i32, i32, i32
  }
  func.func @transform_2(%arg0: i32, %arg1: i32) -> (i32, i32, i32, i32) {
    %c0_i32 = arith.constant 0 : i32
    %c0_i32_0 = arith.constant 0 : i32
    %c0_i32_1 = arith.constant 0 : i32
    %c0_i32_2 = arith.constant 0 : i32
    %c0_i32_3 = arith.constant 0 : i32
    return %c0_i32, %c0_i32_0, %c0_i32_1, %c0_i32_2 : i32, i32, i32, i32
  }
  func.func @transform_3(%arg0: i32, %arg1: i32) -> (i32, i32, i32, i32) {
    %c0_i32 = arith.constant 0 : i32
    %c0_i32_0 = arith.constant 0 : i32
    %c0_i32_1 = arith.constant 0 : i32
    return %arg0, %c0_i32, %arg1, %c0_i32_0 : i32, i32, i32, i32
  }
  func.func @transform_4(%arg0: i32, %arg1: i32) -> (i32, i32, i32, i32) {
    %c0_i32 = arith.constant 0 : i32
    %c0_i32_0 = arith.constant 0 : i32
    %c0_i32_1 = arith.constant 0 : i32
    return %arg0, %c0_i32, %arg1, %c0_i32_0 : i32, i32, i32, i32
  }
}

</mosaic_0001>

<bundles_post_ra>
// kernel: tpu_custom_call.1
= control target key start
LH: loop header
LB: loop body
LE: loop exit
PB: predicated region body
PF: predicated region fallthrough
CT: control target
= control target key end

     0   :  { %10 = vsyncpa [#allocation3], 0  ;;  %s1028_s0 = inlined_call_operand.hbm [shape: f32[2,4,8,128], index: 0, kind: input, shape index: {}]   ;;  %s1029_s1 = inlined_call_operand.vmem [shape: f32[1,4,1,1], index: 1, kind: input, shape index: {}]   ;;  %s1030_s2 = inlined_call_operand.vmem [shape: f32[1,4,1,1], index: 2, kind: input, shape index: {}]   ;;  %s1031_s3 = inlined_call_operand.hbm [shape: f32[2,4,8,128], index: 3, kind: output, shape index: {0}]   ;;  %s1032_s4 = inlined_call_operand.hbm [shape: f32[2,1,8,128], index: 4, kind: output, shape index: {1}]  }
   0x1   :  { %12 = vsyncpa [#allocation3 + $0x1], 0 }
   0x2   :  { %13 = vsyncpa [#allocation4], 0 }
   0x3   :  { %15 = vsyncpa [#allocation4 + $0x1], 0 }
   0x4   :  { %16 = vsyncpa [#allocation7], 0 }
   0x5   :  { %18 = vsyncpa [#allocation7 + $0x1], 0  ;;  %s792_s15 = smov 0   ;;  %s794_s16 = smov 0  }
   0x6   :  { %s796_s17 = smov 0   ;;  %s798_s18 = smov 0  }
   0x7   :  { %s800_s19 = smov 0   ;;  %s802_s20 = smov 0  }
   0x8 LB: > { %s505_s21 = sadd.s32 4294967295, %s756_s20   ;;  %s506_s22 = sadd.s32 4294967294, %s756_s20   ;;  %s756_s20 = sphi %s802_s20, %s24_s20   ;;  %s752_s19 = sphi %s800_s19, %s1047_s19   ;;  %s748_s18 = sphi %s798_s18, %s1046_s18   ;;  %s744_s17 = sphi %s796_s17, %s1045_s17   ;;  %s740_s16 = sphi %s794_s16, %s1044_s16   ;;  %s736_s15 = sphi %s792_s15, %s1043_s15  }
   0x9   : > { %s36_s23 = sadd.s32 1, %s752_s19  ;;  %s45_s24 = sadd.s32 1, %s744_s17 }
   0xa   : > { %p38_p0 = scmp.ge.s32.totalorder %s36_s23, 2  ;;  %p52_p1 = scmp.ne.s32.totalorder %s744_s17, %s740_s16 }
   0xb   : > { %p53_p2 = scmp.eq.s32.totalorder %s756_s20, 0  ;;  %p58_p3 = scmp.ne.s32.totalorder %s740_s16, %s736_s15 }
   0xc   : > { %s1049_s23 = smov (%p38_p0, %s36_s23), 0  ;;  %p59_p5 = scmp.eq.s32.totalorder %s505_s21, 0 }
   0xd   : > { %p833_p4 = por %p53_p2, %p52_p1  ;;  %s40_s26 = ssub.s32 %s752_s19, %s1049_s23 }
   0xe   : > { %p126_p6 = scmp.eq.s32.totalorder %s505_s21, 1  ;;  %p43_p7 = scmp.eq.s32.totalorder %s40_s26, 0 }
   0xf   : > { %p839_p8 = por %p59_p5, %p58_p3  ;;  %p132_p10 = scmp.eq.s32.totalorder %s506_s22, 1 }
  0x10   : > { %p843_p9 = por %p126_p6, %p52_p1  ;;  %p551_p13 = scmp.lt.s32.totalorder %s756_s20, 2 }
  0x11   : > { %s848_s29 = scalar_select %p43_p7, %s744_s17, %s45_s24  }
  0x12   : > { %s1036_s28 = scalar_select %p843_p9, 1, 0 }
  0x13   : > { %p850_p11 = por %p132_p10, %p58_p3  ;;  %s186_s5 = sand.u32 1, %s744_s17  }
  0x14   : > { %s509_s6 = sshll.u32 %s186_s5, 5  ;;  %s532_s7 = sshll.u32 %s752_s19, 9 }
  0x15   : > { %s1037_s30 = scalar_select %p850_p11, 1, 0 }
  0x16   : > { %s861_s10 = scalar_lea.hbm %s1028_s0, %s532_s7  ;;  %s190_s11 = scalar_lea.vmem [#allocation2], %s509_s6 }
  0x17   : > { %s198_s12 = sshll.u32 %s190_s11, 4  ;;  %p867_p0 = pnand %p551_p13, %p833_p4  ;;  %s863_s12 = int_to_ptr.vmem [resolvable:$true] %s198_s12 }
  0x18   : > { %s872_s14 = scalar_lea.sflag [#allocation3], %s186_s5  ;;  %s609_s21 = scalar_lea.hbm %s861_s10, 512 }
  0x19   : > { %p610_p2 = scmp.ne.s32.totalorder %s861_s10, %s609_s21  ;;  %p611_p3 = pneg %p867_p0 }
  0x1a   : > { %s614_s25 = scalar_lea.hbm %s1028_s0, 1024  ;;  %p615_p4 = scmp.lt.u32.totalorder %s861_s10, %s1028_s0 }
  0x1b   : > { %p612_p5 = pnand %p611_p3, %p610_p2  ;;  %p616_p7 = scmp.lt.u32.totalorder %s614_s25, %s609_s21 }
  0x1c   : > { %p618_p13 = scmp.lt.u32.totalorder %s609_s21, %s861_s10 }
  0x1d   : > { %p613_p6 = pneg %p612_p5  ;;  %p617_p10 = por %p616_p7, %p615_p4 }
  0x1f   : > { %p619_p12 = por %p618_p13, %p617_p10 }
  0x21   : > { %p620_p1 = pnand %p619_p12, %p613_p6 }
  0x23   : > { %623 = shalt.err (!%p620_p1)
}
  0x24   : > { %s624_s5 = scalar_lea.vmem %s863_s12, 512  ;;  %s758_s7 = smov [#allocation2]  }
  0x25   : > { %p625_p2 = scmp.ne.s32.totalorder %s863_s12, %s624_s5  ;;  %s629_s8 = sshll.u32 %s758_s7, 4  ;;  %s630_s8 = int_to_ptr.vmem [resolvable:$false] %s629_s8 }
  0x26   : > { %s631_s9 = scalar_lea.vmem %s630_s8, 1024  ;;  %p632_p9 = scmp.lt.s32.totalorder %s863_s12, %s630_s8 }
  0x27   : > { %p627_p5 = pnand %p625_p2, %p611_p3  ;;  %p633_p4 = scmp.lt.s32.totalorder %s631_s9, %s624_s5 }
  0x29   : > { %p628_p11 = pneg %p627_p5  ;;  %p634_p7 = por %p633_p4, %p632_p9 }
  0x2b   : > { %p635_p10 = pnand %p634_p7, %p628_p11 }
  0x2d   : > { %638 = shalt.err (!%p635_p10)
}
  0x2e   : > { %s759_s11 = smov 128   ;;  %s760_s21 = smov 8  }
  0x2f   : > { %543 = dma.hbm_to_vmem [thread:$0]  (!%p867_p0), %s861_s10, 512, %s863_s12, %s872_s14, %s759_s11, %s759_s11, %s760_s21  }
  0x30   : > { %p206_p12 = scmp.lt.s32.totalorder %s756_s20, 3  ;;  %p1039_p1 = scmp.ge.s32.totalorder %s756_s20, 1 }
  0x32   : > { %p207_p3 = pnand %p1039_p1, %p206_p12 }
  0x33   : > { %s904_s22 = sand.u32 (!%p207_p3), 1, %s740_s16  }
  0x34   : > { %210 = sbr.rel (%p207_p3) target bundleno = 219 (0xdb), region = 32  ;;  %s513_s24 = sshll.u32 (!%p207_p3), %s904_s22, 5 }
  0x35   : > { %s213_s25 = scalar_lea.sflag (!%p207_p3), [#allocation3], %s904_s22  ;;  %s216_s26 = scalar_lea.vmem (!%p207_p3), [#allocation2], %s513_s24 }
  0x3b   : > { %720 = dma.done.wait (%p839_p8), %s213_s25, 512  }
  0x3c   : > { %722 = vsyncadd (%p839_p8), %s213_s25, 4294966784  ;;  %v761_v0 = vmov 0   ;;  %v518_v1 = vld [vmem:[%s1029_s1 + $0x2] ss:$0 sm:$0xff]  ;;  %v516_v2 = vld [vmem:[%s1029_s1] ss:$0 sm:$0xff] }
  0x3d   : > { %608 = vset.pattern.permute.xlu1 %v761_v0  ;;  %607 = vset.pattern.permute.xlu0 %v761_v0  ;;  %v519_v3 = vld [vmem:[%s1029_s1 + $0x3] ss:$0 sm:$0xff]  ;;  %v517_v4 = vld [vmem:[%s1029_s1 + $0x1] ss:$0 sm:$0xff]  ;;  %v926_v5 = vld [vmem:[%s216_s26 + $0x10] sm:$0xff]  ;;  %s515_s13 = sshll.u32 %s904_s22, 3 }
  0x3e   : > { %287 = vperm.xlu1 %608, %v518_v1   ;;  %279 = vperm.xlu0 %607, %v516_v2   ;;  %v246_v6 = vld [vmem:[%s216_s26] sm:$0xff]  ;;  %v928_v7 = vld [vmem:[%s216_s26 + $0x18] sm:$0xff]  ;;  %v247_v8 = vld [vmem:[%s216_s26 + $0x8] sm:$0xff]  ;;  %v762_v14 = vmov 0.0   ;;  %s529_s14 = sshll.u32 %s748_s18, 7  ;;  %s245_s6 = scalar_lea.vmem [#allocation6], %s515_s13 }
  0x3f   : > { %v521_v9 = vld [vmem:[%s1030_s2 + $0x1] ss:$0 sm:$0xff]  ;;  %v520_v10 = vld [vmem:[%s1030_s2] ss:$0 sm:$0xff]  ;;  %731 = vmaxabs.init.f32.vacc0 %v926_v5, %v928_v7  ;;  %v523_v12 = vld [vmem:[%s1030_s2 + $0x3] ss:$0 sm:$0xff]  ;;  %s949_s27 = scalar_lea.hbm %s1032_s4, %s529_s14 }
  0x40   : > { %v522_v13 = vld [vmem:[%s1030_s2 + $0x2] ss:$0 sm:$0xff]  ;;  %s390_s8 = sshll.u32 %s245_s6, 4  ;;  %s359_s9 = scalar_lea.sflag [#allocation7], %s904_s22  ;;  %s391_s8 = int_to_ptr.vmem [resolvable:$true] %s390_s8 }
  0x41   : > { %732 = vmaxabs.f32.vacc0 %v246_v6, %v247_v8  ;;  %s639_s11 = scalar_lea.vmem %s391_s8, 128  ;;  %p1040_p9 = scmp.ne.s32.totalorder %s1036_s28, 0 }
  0x42   : > { %291 = vperm.xlu1 %608, %v519_v3   ;;  %283 = vperm.xlu0 %607, %v517_v4   ;;  %p640_p8 = scmp.ne.s32.totalorder %s391_s8, %s639_s11  ;;  %s763_s21 = smov [#allocation6]  }
  0x43   : > { %v733_v11 = vmovacc.low.even.vacc0  ;;  %s643_s25 = sshll.u32 %s763_s21, 4  ;;  %s644_s25 = int_to_ptr.vmem [resolvable:$false] %s643_s25 }
  0x44   : > { %p641_p11 = pnand %p640_p8, %p1040_p9  ;;  %s645_s26 = scalar_lea.vmem %s644_s25, 256 }
  0x45   : > { %vm349_vm0 = vcmp.gt.f32.partialorder %v733_v11, 0.0  ;;  %p646_p6 = scmp.lt.s32.totalorder %s391_s8, %s644_s25  ;;  %p647_p13 = scmp.lt.s32.totalorder %s645_s26, %s639_s11 }
  0x46   : > { %323 = vperm.xlu1 %608, %v521_v9   ;;  %319 = vperm.xlu0 %607, %v520_v10   ;;  %v524_v15 = vsel %vm349_vm0, 1.0, %v762_v14  ;;  %p642_p0 = pneg %p641_p11 }
  0x47   : > { %352 = vst [vmem:[%s245_s6] sm:$0xff] %v524_v15  ;;  %p648_p2 = por %p647_p13, %p646_p6 }
  0x49   : > { %p649_p5 = pnand %p648_p2, %p642_p0 }
  0x4a   : > { %331 = vperm.xlu1 %608, %v523_v12   ;;  %327 = vperm.xlu0 %607, %v522_v13  }
  0x4b   : > { %652 = shalt.err (!%p649_p5)
}
  0x4c   : > { %s653_s10 = scalar_lea.hbm %s949_s27, 128  ;;  %s657_s14 = scalar_lea.hbm %s1032_s4, 256 }
  0x4d   : > { %p654_p4 = scmp.ne.s32.totalorder %s949_s27, %s653_s10  ;;  %p658_p12 = scmp.lt.u32.totalorder %s949_s27, %s1032_s4 }
  0x4e   : > { %p659_p1 = scmp.lt.u32.totalorder %s657_s14, %s653_s10  ;;  %p661_p8 = scmp.lt.u32.totalorder %s653_s10, %s949_s27 }
  0x4f   : > { %p655_p7 = pnand %p654_p4, %p1040_p9 }
  0x50   : > { %p660_p3 = por %p659_p1, %p658_p12 }
  0x51   : > { %p656_p10 = pneg %p655_p7 }
  0x52   : > { %p662_p11 = por %p661_p8, %p660_p3 }
  0x54   : > { %p663_p0 = pnand %p662_p11, %p656_p10 }
  0x56   : > { %666 = shalt.err (!%p663_p0)
}
  0x57   : > { %537 = dma.vmem_to_hbm [thread:$0]  (%p1040_p9), %s391_s8, 128, %s949_s27, %s359_s9  }
  0x58   : > { %s238_s7 = scalar_lea.vmem [#allocation5], %s513_s24  ;;  %s533_s21 = sshll.u32 %s748_s18, 9 }
  0x59   : > { %s373_s11 = sshll.u32 %s238_s7, 4  ;;  %s979_s8 = scalar_lea.hbm %s1031_s3, %s533_s21  ;;  %s974_s11 = int_to_ptr.vmem [resolvable:$true] %s373_s11 }
  0x5a   : > { %s354_s18 = scalar_lea.sflag [#allocation4], %s904_s22  ;;  %s667_s9 = scalar_lea.vmem %s974_s11, 512 }
  0x5b   : > { %p668_p6 = scmp.ne.s32.totalorder %s974_s11, %s667_s9  ;;  %s764_s25 = smov [#allocation5]  }
  0x5c   : > { %s671_s26 = sshll.u32 %s764_s25, 4  ;;  %s672_s26 = int_to_ptr.vmem [resolvable:$false] %s671_s26 }
  0x5d   : > { %p669_p13 = pnand %p668_p6, %p1040_p9  ;;  %s673_s10 = scalar_lea.vmem %s672_s26, 1024 }
  0x5e   : > { %p674_p5 = scmp.lt.s32.totalorder %s974_s11, %s672_s26  ;;  %p675_p4 = scmp.lt.s32.totalorder %s673_s10, %s667_s9 }
  0x5f   : > { %p670_p2 = pneg %p669_p13 }
  0x60   : > { %p676_p7 = por %p675_p4, %p674_p5 }
  0x62   : > { %p677_p10 = pnand %p676_p7, %p670_p2 }
  0xbd   : > { %v288_v16 = vpop.permute.xlu1 %287  ;;  %v280_v17 = vpop.permute.xlu0 %279 }
  0xbe   : > { %v294_v20 = vmul.f32 %v280_v17, %v246_v6  ;;  %v296_v26 = vmul.f32 %v288_v16, %v926_v5 }
  0xc1   : > { %v292_v18 = vpop.permute.xlu1 %291  ;;  %v284_v19 = vpop.permute.xlu0 %283 }
  0xc2   : > { %v295_v21 = vmul.f32 %v284_v19, %v247_v8  ;;  %v297_v27 = vmul.f32 %v292_v18, %v928_v7 }
  0xc5   : > { %v324_v22 = vpop.permute.xlu1 %323  ;;  %v320_v23 = vpop.permute.xlu0 %319 }
  0xc6   : > { %v335_v24 = vadd.f32 %v324_v22, %v295_v21  ;;  %v334_v25 = vadd.f32 %v320_v23, %v294_v20 }
  0xc8   : > { %339 = vst [vmem:[%s238_s7 + $0x8] sm:$0xff] %v335_v24  ;;  %338 = vst [vmem:[%s238_s7] sm:$0xff] %v334_v25 }
  0xc9   : > { %v332_v28 = vpop.permute.xlu1 %331  ;;  %v328_v29 = vpop.permute.xlu0 %327 }
  0xca   : > { %v337_v30 = vadd.f32 %v332_v28, %v297_v27  ;;  %v336_v31 = vadd.f32 %v328_v29, %v296_v26 }
  0xcc   : > { %341 = vst [vmem:[%s238_s7 + $0x18] sm:$0xff] %v337_v30  ;;  %340 = vst [vmem:[%s238_s7 + $0x10] sm:$0xff] %v336_v31 }
  0xcd   : > { %680 = shalt.err (!%p677_p10)
}
  0xce   : > { %s681_s12 = scalar_lea.hbm %s979_s8, 512  ;;  %s685_s6 = scalar_lea.hbm %s1031_s3, 1024 }
  0xcf   : > { %p682_p12 = scmp.ne.s32.totalorder %s979_s8, %s681_s12  ;;  %p686_p8 = scmp.lt.u32.totalorder %s979_s8, %s1031_s3 }
  0xd0   : > { %p687_p11 = scmp.lt.u32.totalorder %s685_s6, %s681_s12  ;;  %p689_p6 = scmp.lt.u32.totalorder %s681_s12, %s979_s8 }
  0xd1   : > { %p683_p1 = pnand %p682_p12, %p1040_p9 }
  0xd2   : > { %p688_p0 = por %p687_p11, %p686_p8 }
  0xd3   : > { %p684_p3 = pneg %p683_p1 }
  0xd4   : > { %p690_p13 = por %p689_p6, %p688_p0 }
  0xd6   : > { %p691_p2 = pnand %p690_p13, %p684_p3 }
  0xd8   : > { %694 = shalt.err (!%p691_p2)
}
  0xd9   : > { %s765_s21 = smov 128   ;;  %s766_s24 = smov 8  }
  0xda   : > { %536 = dma.vmem_to_hbm [thread:$0]  (%p1040_p9), %s974_s11, 512, %s979_s8, %s354_s18, %s765_s21, %s765_s21, %s766_s24  }
  0xdb PF: > { %s402_s27 = sand.u32 1, %s736_s15   ;;  %p1041_p5 = scmp.ne.s32.totalorder %s1037_s30, 0 }
  0xdc   : > { %p1042_p4 = scmp.ge.s32.totalorder %s756_s20, 2  ;;  %s403_s9 = scalar_lea.sflag [#allocation4], %s402_s27 }
  0xde   : > { %p545_p7 = pnand %p1042_p4, %p1041_p5 }
  0xe0   : > { %724 = dma.done.wait (!%p545_p7), %s403_s9, 512  }
  0xe1   : > { %726 = vsyncadd (!%p545_p7), %s403_s9, 4294966784  ;;  %s412_s25 = scalar_lea.sflag [#allocation7], %s402_s27 }
  0xe2   : > { %728 = dma.done.wait (!%p545_p7), %s412_s25, 128  }
  0xe3   : > { %730 = vsyncadd (!%p545_p7), %s412_s25, 4294967168  ;;  %s24_s20 = sadd.s32 1, %s756_s20   ;;  %s1043_s15 = smov %s740_s16 }
  0xe4   : > { %p21_p10 = scmp.ge.s32.totalorder %s24_s20, 4   ;;  %s1044_s16 = smov %s744_s17 }
  0xe5   : > { %s1045_s17 = smov %s848_s29  ;;  %s1046_s18 = smov %s752_s19 }
  0xe6   : > { %s1047_s19 = smov %s1049_s23  ;;  %23 = sbr.rel (!%p21_p10) target bundleno = 8 (0x8), region = 94 }
  0xed   :  { %417 = vsyncpa [#allocation3], 1 }
  0xee   :  { %419 = vsyncpa [#allocation3 + $0x1], 1 }
  0xef   :  { %420 = vsyncpa [#allocation4], 1 }
  0xf0   :  { %422 = vsyncpa [#allocation4 + $0x1], 1 }
  0xf1   :  { %423 = vsyncpa [#allocation7], 1 }
  0xf2   :  { %425 = vsyncpa [#allocation7 + $0x1], 1 }

</bundles_post_ra>
